<compile_context>
chip_gen: v6e
topology: v6e:2x2x1
jax: 0.10.0
libtpu: 0.0.40
codegen_flags: <defaults>
</compile_context>

<pallas_src>
import functools

import jax
import jax.numpy as jnp
from jax.experimental import pallas as pl
from jax.experimental.pallas import tpu as pltpu


# ----------------------------------------------------------------------------
# Kernel: both branches fused, one batch tile per grid step.
# ----------------------------------------------------------------------------
def _fused_kernel(x1_ref, x2_ref,
                  w1a_ref, b1a_ref, w1b_ref, b1b_ref,
                  w2a_ref, b2a_ref, w2b_ref, b2b_ref,
                  o_ref, *, out_width):
    f32 = jnp.float32

    def branch(x_ref, wa_ref, ba_ref, wb_ref, bb_ref):
        # shrink layer + bias + ReLU (f32 accumulation on the MXU)
        h = jnp.dot(x_ref[...], wa_ref[...], preferred_element_type=f32)
        h = jnp.maximum(h + ba_ref[...], 0.0)
        # dropout: identity (inference mode)
        # hidden layer + bias
        y = jnp.dot(h.astype(wb_ref.dtype), wb_ref[...],
                    preferred_element_type=f32)
        return y + bb_ref[...]

    y1 = branch(x1_ref, w1a_ref, b1a_ref, w1b_ref, b1b_ref)
    y2 = branch(x2_ref, w2a_ref, b2a_ref, w2b_ref, b2b_ref)
    # Fusion: elementwise product; store only the real out_width lanes.
    o_ref[...] = (y1[:, :out_width] * y2[:, :out_width]).astype(o_ref.dtype)


# ----------------------------------------------------------------------------
# Wrapper
# ----------------------------------------------------------------------------
def shrinking_fusion_ff(x1, x2, packed, *, out_width, block_batch=1024,
                        out_dtype=None):
    """Fused forward. x1: (B, in1), x2: (B, in2) -> (B, out_width)."""
    (w1a, b1a, w1b, b1b, w2a, b2a, w2b, b2b) = packed
    B, in1 = x1.shape
    in2 = x2.shape[1]

    cdt = w1a.dtype                      # compute/storage dtype (f32 or bf16)
    x1 = x1.astype(cdt)
    x2 = x2.astype(cdt)
    out_dtype = out_dtype or cdt

    # Batch tile: <= block_batch, multiple of 8 sublanes, and <= ceil(B/2)
    # (rounded up) so the grid has >=2 steps when B permits (v7x megacore).
    half = -(-B // 2)
    TB = min(block_batch, max(8, ((half + 7) // 8) * 8))
    grid = (pl.cdiv(B, TB),)             # ragged last tile handled by Pallas

    # TODO(synk): if profiling at large TB shows exposed DMA, add
    # pipeline_mode=pl.Buffered(3) to the x/out BlockSpecs.
    out = pl.pallas_call(
        functools.partial(_fused_kernel, out_width=out_width),
        out_shape=jax.ShapeDtypeStruct((B, out_width), out_dtype),
        grid_spec=pltpu.PrefetchScalarGridSpec(
            num_scalar_prefetch=0,
            grid=grid,
            in_specs=[
                pl.BlockSpec((TB, in1), lambda i: (i, 0)),   # x1 tile
                pl.BlockSpec((TB, in2), lambda i: (i, 0)),   # x2 tile
                pl.BlockSpec(w1a.shape, lambda i: (0, 0)),   # weights resident
                pl.BlockSpec(b1a.shape, lambda i: (0, 0)),
                pl.BlockSpec(w1b.shape, lambda i: (0, 0)),
                pl.BlockSpec(b1b.shape, lambda i: (0, 0)),
                pl.BlockSpec(w2a.shape, lambda i: (0, 0)),
                pl.BlockSpec(b2a.shape, lambda i: (0, 0)),
                pl.BlockSpec(w2b.shape, lambda i: (0, 0)),
                pl.BlockSpec(b2b.shape, lambda i: (0, 0)),
            ],
            out_specs=pl.BlockSpec((TB, out_width), lambda i: (i, 0)),
        ),
        compiler_params=pltpu.CompilerParams(
            dimension_semantics=("parallel",),       # batch tiles independent
            vmem_limit_bytes=32 * 1024 * 1024,       # safe on v5e/v6e/v7x
        ),
    )(x1, x2, w1a, b1a, w1b, b1b, w2a, b2a, w2b, b2b)
    return out


# ----------------------------------------------------------------------------
# Parameter init (PyTorch-style) + lane-padded per-branch packing.
# Weights stored as (in_features, out_features) == torch Linear.weight.T.
# ----------------------------------------------------------------------------
def init_params(key, in1_width, in2_width, out_width, dtype=jnp.float32):
    def linear(k, fan_in, fan_out):
        kw, kb = jax.random.split(k)
        bound = 1.0 / jnp.sqrt(fan_in)
        w = jax.random.uniform(kw, (fan_in, fan_out), dtype, -bound, bound)
        b = jax.random.uniform(kb, (1, fan_out), dtype, -bound, bound)
        return w, b

    k1a, k1b, k2a, k2b = jax.random.split(key, 4)
    w1a, b1a = linear(k1a, in1_width, out_width)   # shrinking_1.shrink_layer
    w1b, b1b = linear(k1b, out_width, out_width)   # shrinking_1.hidden_layer
    w2a, b2a = linear(k2a, in2_width, out_width)   # shrinking_2.shrink_layer
    w2b, b2b = linear(k2b, out_width, out_width)   # shrinking_2.hidden_layer
    return (w1a, b1a, w1b, b1b, w2a, b2a, w2b, b2b)


def pack_params(params, out_width, compute_dtype=None):
    """Pad the hidden/output lane dims of each Linear to a multiple of 128.

    Weights are tiny and resident in VMEM across all grid steps, so padding
    costs nothing; padded bias lanes are zero so padded activations stay 0.
    Pass compute_dtype=jnp.bfloat16 on v6e/v7x (and v5e MXU) to halve the
    x/W HBM bytes; accumulation stays f32 inside the kernel.
    """
    (w1a, b1a, w1b, b1b, w2a, b2a, w2b, b2b) = params
    dt = compute_dtype or w1a.dtype
    n_pad = max(128, ((out_width + 127) // 128) * 128)

    def pad_w(w, rpad):
        out = jnp.zeros((rpad, n_pad), dt)
        return out.at[:w.shape[0], :w.shape[1]].set(w.astype(dt))

    def pad_b(b):
        out = jnp.zeros((1, n_pad), jnp.float32)
        return out.at[:, :out_width].set(b.astype(jnp.float32))

    return (pad_w(w1a, w1a.shape[0]), pad_b(b1a),
            pad_w(w1b, n_pad),        pad_b(b1b),
            pad_w(w2a, w2a.shape[0]), pad_b(b2a),
            pad_w(w2b, n_pad),        pad_b(b2b))


def reference(x1, x2, params):
    (w1a, b1a, w1b, b1b, w2a, b2a, w2b, b2b) = params
    h1 = jnp.maximum(x1 @ w1a + b1a, 0.0) @ w1b + b1b
    h2 = jnp.maximum(x2 @ w2a + b2a, 0.0) @ w2b + b2b
    return h1 * h2


if __name__ == "__main__":
    # inputs[0]: (batch, in1_width), inputs[1]: (batch, in2_width)
    batch, in1_width, in2_width, out_width = 8, 32, 48, 16

    key = jax.random.PRNGKey(0)
    kx1, kx2, kx3, kx4, kp = jax.random.split(key, 5)
    x1 = jax.random.normal(kx1, (batch, in1_width), jnp.float32)
    x2 = jax.random.normal(kx2, (batch, in2_width), jnp.float32)

    params = init_params(kp, in1_width, in2_width, out_width)

    # --- f32 path (tight numeric check) -------------------------------------
    packed_f32 = pack_params(params, out_width)
    out = shrinking_fusion_ff(x1, x2, packed_f32, out_width=out_width)
    out = jax.block_until_ready(out)
    ref = reference(x1, x2, params)
    assert out.shape == (batch, out_width)
    assert jnp.allclose(out, ref, atol=1e-5, rtol=1e-5)

    # --- ragged batch (B not a multiple of the tile): exercises cdiv grid ----
    batch_r = 20
    x1r = jax.random.normal(kx3, (batch_r, in1_width), jnp.float32)
    x2r = jax.random.normal(kx4, (batch_r, in2_width), jnp.float32)
    out_r = shrinking_fusion_ff(x1r, x2r, packed_f32, out_width=out_width)
    out_r = jax.block_until_ready(out_r)
    assert out_r.shape == (batch_r, out_width)
    assert jnp.allclose(out_r, reference(x1r, x2r, params), atol=1e-5, rtol=1e-5)

    # --- bf16 storage path (halved HBM bytes; f32 MXU accumulation) ----------
    packed_bf16 = pack_params(params, out_width, compute_dtype=jnp.bfloat16)
    out_bf16 = shrinking_fusion_ff(x1, x2, packed_bf16, out_width=out_width)
    out_bf16 = jax.block_until_ready(out_bf16)
    assert out_bf16.shape == (batch, out_width)
    assert jnp.allclose(out_bf16.astype(jnp.float32), ref, atol=5e-2, rtol=5e-2)

    print("KERNEL_OK")
</pallas_src>

<mosaic_0001>
module attributes {stable_mosaic.version = 11 : i64} {
  func.func @_fused_kernel(%arg0: i32, %arg1: memref<8x32xf32, #tpu.memory_space<vmem>>, %arg2: memref<8x48xf32, #tpu.memory_space<vmem>>, %arg3: memref<32x128xf32, #tpu.memory_space<vmem>>, %arg4: memref<1x128xf32, #tpu.memory_space<vmem>>, %arg5: memref<128x128xf32, #tpu.memory_space<vmem>>, %arg6: memref<1x128xf32, #tpu.memory_space<vmem>>, %arg7: memref<48x128xf32, #tpu.memory_space<vmem>>, %arg8: memref<1x128xf32, #tpu.memory_space<vmem>>, %arg9: memref<128x128xf32, #tpu.memory_space<vmem>>, %arg10: memref<1x128xf32, #tpu.memory_space<vmem>>, %arg11: memref<8x16xf32, #tpu.memory_space<vmem>>) attributes {dimension_semantics = [#tpu.dimension_semantics<parallel>], iteration_bounds = array<i64: 1>, scalar_prefetch = 0 : i64, scratch_operands = 0 : i64, tpu.core_type = #tpu.core_type<tc>, window_params = [{transform_indices = @transform_0, window_bounds = array<i64: 8, 32>}, {transform_indices = @transform_1, window_bounds = array<i64: 8, 48>}, {pipeline_mode = #tpu.pipeline_mode<synchronous>, transform_indices = @transform_2, window_bounds = array<i64: 32, 128>}, {pipeline_mode = #tpu.pipeline_mode<synchronous>, transform_indices = @transform_3, window_bounds = array<i64: 1, 128>}, {pipeline_mode = #tpu.pipeline_mode<synchronous>, transform_indices = @transform_4, window_bounds = array<i64: 128, 128>}, {pipeline_mode = #tpu.pipeline_mode<synchronous>, transform_indices = @transform_5, window_bounds = array<i64: 1, 128>}, {pipeline_mode = #tpu.pipeline_mode<synchronous>, transform_indices = @transform_6, window_bounds = array<i64: 48, 128>}, {pipeline_mode = #tpu.pipeline_mode<synchronous>, transform_indices = @transform_7, window_bounds = array<i64: 1, 128>}, {pipeline_mode = #tpu.pipeline_mode<synchronous>, transform_indices = @transform_8, window_bounds = array<i64: 128, 128>}, {pipeline_mode = #tpu.pipeline_mode<synchronous>, transform_indices = @transform_9, window_bounds = array<i64: 1, 128>}, {transform_indices = @transform_10, window_bounds = array<i64: 8, 16>}]} {
    %c0 = arith.constant 0 : index
    %c0_0 = arith.constant 0 : index
    %0 = vector.load %arg1[%c0, %c0_0] : memref<8x32xf32, #tpu.memory_space<vmem>>, vector<8x32xf32>
    %c0_1 = arith.constant 0 : index
    %c0_2 = arith.constant 0 : index
    %1 = vector.load %arg3[%c0_1, %c0_2] : memref<32x128xf32, #tpu.memory_space<vmem>>, vector<32x128xf32>
    %cst = arith.constant dense<0.000000e+00> : vector<8x128xf32>
    %2 = tpu.matmul %0, %1, %cst {dimension_numbers = #tpu.dot_dimension_numbers<[1], [0], [0], [1], [0, 0, 1, 1], [], []>} : vector<8x32xf32>, vector<32x128xf32>, vector<8x128xf32> -> vector<8x128xf32>
    %c0_3 = arith.constant 0 : index
    %c0_4 = arith.constant 0 : index
    %3 = vector.load %arg4[%c0_3, %c0_4] : memref<1x128xf32, #tpu.memory_space<vmem>>, vector<1x128xf32>
    %4 = vector.broadcast %3 : vector<1x128xf32> to vector<8x128xf32>
    %5 = arith.addf %2, %4 : vector<8x128xf32>
    %cst_5 = arith.constant 0.000000e+00 : f32
    %6 = vector.broadcast %cst_5 : f32 to vector<8x128xf32>
    %7 = arith.maximumf %5, %6 : vector<8x128xf32>
    %c0_6 = arith.constant 0 : index
    %c0_7 = arith.constant 0 : index
    %8 = vector.load %arg5[%c0_6, %c0_7] : memref<128x128xf32, #tpu.memory_space<vmem>>, vector<128x128xf32>
    %cst_8 = arith.constant dense<0.000000e+00> : vector<8x128xf32>
    %9 = tpu.matmul %7, %8, %cst_8 {dimension_numbers = #tpu.dot_dimension_numbers<[1], [0], [0], [1], [0, 0, 1, 1], [], []>} : vector<8x128xf32>, vector<128x128xf32>, vector<8x128xf32> -> vector<8x128xf32>
    %c0_9 = arith.constant 0 : index
    %c0_10 = arith.constant 0 : index
    %10 = vector.load %arg6[%c0_9, %c0_10] : memref<1x128xf32, #tpu.memory_space<vmem>>, vector<1x128xf32>
    %11 = vector.broadcast %10 : vector<1x128xf32> to vector<8x128xf32>
    %12 = arith.addf %9, %11 : vector<8x128xf32>
    %c0_11 = arith.constant 0 : index
    %c0_12 = arith.constant 0 : index
    %13 = vector.load %arg2[%c0_11, %c0_12] : memref<8x48xf32, #tpu.memory_space<vmem>>, vector<8x48xf32>
    %c0_13 = arith.constant 0 : index
    %c0_14 = arith.constant 0 : index
    %14 = vector.load %arg7[%c0_13, %c0_14] : memref<48x128xf32, #tpu.memory_space<vmem>>, vector<48x128xf32>
    %cst_15 = arith.constant dense<0.000000e+00> : vector<8x128xf32>
    %15 = tpu.matmul %13, %14, %cst_15 {dimension_numbers = #tpu.dot_dimension_numbers<[1], [0], [0], [1], [0, 0, 1, 1], [], []>} : vector<8x48xf32>, vector<48x128xf32>, vector<8x128xf32> -> vector<8x128xf32>
    %c0_16 = arith.constant 0 : index
    %c0_17 = arith.constant 0 : index
    %16 = vector.load %arg8[%c0_16, %c0_17] : memref<1x128xf32, #tpu.memory_space<vmem>>, vector<1x128xf32>
    %17 = vector.broadcast %16 : vector<1x128xf32> to vector<8x128xf32>
    %18 = arith.addf %15, %17 : vector<8x128xf32>
    %cst_18 = arith.constant 0.000000e+00 : f32
    %19 = vector.broadcast %cst_18 : f32 to vector<8x128xf32>
    %20 = arith.maximumf %18, %19 : vector<8x128xf32>
    %c0_19 = arith.constant 0 : index
    %c0_20 = arith.constant 0 : index
    %21 = vector.load %arg9[%c0_19, %c0_20] : memref<128x128xf32, #tpu.memory_space<vmem>>, vector<128x128xf32>
    %cst_21 = arith.constant dense<0.000000e+00> : vector<8x128xf32>
    %22 = tpu.matmul %20, %21, %cst_21 {dimension_numbers = #tpu.dot_dimension_numbers<[1], [0], [0], [1], [0, 0, 1, 1], [], []>} : vector<8x128xf32>, vector<128x128xf32>, vector<8x128xf32> -> vector<8x128xf32>
    %c0_22 = arith.constant 0 : index
    %c0_23 = arith.constant 0 : index
    %23 = vector.load %arg10[%c0_22, %c0_23] : memref<1x128xf32, #tpu.memory_space<vmem>>, vector<1x128xf32>
    %24 = vector.broadcast %23 : vector<1x128xf32> to vector<8x128xf32>
    %25 = arith.addf %22, %24 : vector<8x128xf32>
    %26 = vector.extract_strided_slice %12 {offsets = [0, 0], sizes = [8, 16], strides = [1, 1]} : vector<8x128xf32> to vector<8x16xf32>
    %27 = vector.extract_strided_slice %25 {offsets = [0, 0], sizes = [8, 16], strides = [1, 1]} : vector<8x128xf32> to vector<8x16xf32>
    %28 = arith.mulf %26, %27 : vector<8x16xf32>
    %c0_24 = arith.constant 0 : index
    %c0_25 = arith.constant 0 : index
    %29 = vector.load %arg11[%c0_24, %c0_25] : memref<8x16xf32, #tpu.memory_space<vmem>>, vector<8x16xf32>
    tpu.vector_store %arg11[%c0_24, %c0_25], %28 {strides = array<i32>} : memref<8x16xf32, #tpu.memory_space<vmem>>, vector<8x16xf32>,
    return
  }
  func.func @transform_0(%arg0: i32) -> (i32, i32) {
    %c0_i32 = arith.constant 0 : i32
    %c0_i32_0 = arith.constant 0 : i32
    return %arg0, %c0_i32 : i32, i32
  }
  func.func @transform_1(%arg0: i32) -> (i32, i32) {
    %c0_i32 = arith.constant 0 : i32
    %c0_i32_0 = arith.constant 0 : i32
    return %arg0, %c0_i32 : i32, i32
  }
  func.func @transform_2(%arg0: i32) -> (i32, i32) {
    %c0_i32 = arith.constant 0 : i32
    %c0_i32_0 = arith.constant 0 : i32
    %c0_i32_1 = arith.constant 0 : i32
    return %c0_i32, %c0_i32_0 : i32, i32
  }
  func.func @transform_3(%arg0: i32) -> (i32, i32) {
    %c0_i32 = arith.constant 0 : i32
    %c0_i32_0 = arith.constant 0 : i32
    %c0_i32_1 = arith.constant 0 : i32
    return %c0_i32, %c0_i32_0 : i32, i32
  }
  func.func @transform_4(%arg0: i32) -> (i32, i32) {
    %c0_i32 = arith.constant 0 : i32
    %c0_i32_0 = arith.constant 0 : i32
    %c0_i32_1 = arith.constant 0 : i32
    return %c0_i32, %c0_i32_0 : i32, i32
  }
  func.func @transform_5(%arg0: i32) -> (i32, i32) {
    %c0_i32 = arith.constant 0 : i32
    %c0_i32_0 = arith.constant 0 : i32
    %c0_i32_1 = arith.constant 0 : i32
    return %c0_i32, %c0_i32_0 : i32, i32
  }
  func.func @transform_6(%arg0: i32) -> (i32, i32) {
    %c0_i32 = arith.constant 0 : i32
    %c0_i32_0 = arith.constant 0 : i32
    %c0_i32_1 = arith.constant 0 : i32
    return %c0_i32, %c0_i32_0 : i32, i32
  }
  func.func @transform_7(%arg0: i32) -> (i32, i32) {
    %c0_i32 = arith.constant 0 : i32
    %c0_i32_0 = arith.constant 0 : i32
    %c0_i32_1 = arith.constant 0 : i32
    return %c0_i32, %c0_i32_0 : i32, i32
  }
  func.func @transform_8(%arg0: i32) -> (i32, i32) {
    %c0_i32 = arith.constant 0 : i32
    %c0_i32_0 = arith.constant 0 : i32
    %c0_i32_1 = arith.constant 0 : i32
    return %c0_i32, %c0_i32_0 : i32, i32
  }
  func.func @transform_9(%arg0: i32) -> (i32, i32) {
    %c0_i32 = arith.constant 0 : i32
    %c0_i32_0 = arith.constant 0 : i32
    %c0_i32_1 = arith.constant 0 : i32
    return %c0_i32, %c0_i32_0 : i32, i32
  }
  func.func @transform_10(%arg0: i32) -> (i32, i32) {
    %c0_i32 = arith.constant 0 : i32
    %c0_i32_0 = arith.constant 0 : i32
    return %arg0, %c0_i32 : i32, i32
  }
}

</mosaic_0001>

<bundles_post_ra>
// kernel: tpu_custom_call.1
= control target key start
LH: loop header
LB: loop body
LE: loop exit
PB: predicated region body
PF: predicated region fallthrough
CT: control target
= control target key end

     0   :  { %15 = vsyncpa [#allocation3], 0  ;;  %s967_s0 = inlined_call_operand.hbm [shape: f32[8,32], index: 0, kind: input, shape index: {}]   ;;  %s968_s1 = inlined_call_operand.hbm [shape: f32[8,48], index: 1, kind: input, shape index: {}]   ;;  %s969_s2 = inlined_call_operand.hbm [shape: f32[32,128], index: 2, kind: input, shape index: {}]   ;;  %s970_s3 = inlined_call_operand.vmem [shape: f32[1,128], index: 3, kind: input, shape index: {}]   ;;  %s971_s4 = inlined_call_operand.hbm [shape: f32[128,128], index: 4, kind: input, shape index: {}]   ;;  %s972_s5 = inlined_call_operand.vmem [shape: f32[1,128], index: 5, kind: input, shape index: {}]   ;;  %s973_s6 = inlined_call_operand.hbm [shape: f32[48,128], index: 6, kind: input, shape index: {}]   ;;  %s974_s7 = inlined_call_operand.vmem [shape: f32[1,128], index: 7, kind: input, shape index: {}]   ;;  %s975_s8 = inlined_call_operand.hbm [shape: f32[128,128], index: 8, kind: input, shape index: {}]   ;;  %s976_s9 = inlined_call_operand.vmem [shape: f32[1,128], index: 9, kind: input, shape index: {}]   ;;  %s977_s10 = inlined_call_operand.hbm [shape: f32[8,16], index: 10, kind: output, shape index: {}]  }
   0x1   :  { %16 = vsyncpa [#allocation6], 0 }
   0x2   :  { %17 = vsyncpa [#allocation9], 0 }
   0x3   :  { %18 = vsyncpa [#allocation12], 0 }
   0x4   :  { %19 = vsyncpa [#allocation4], 0  ;;  %s806_s13 = smov [#allocation5]  }
   0x5   :  { %s36_s14 = sshll.u32 %s806_s13, 4  ;;  %s37_s14 = int_to_ptr.vmem [resolvable:$true] %s36_s14 }
   0x6   :  { %s664_s15 = scalar_lea.vmem %s37_s14, 128  ;;  %p669_p1 = scmp.lt.s32.totalorder %s37_s14, %s37_s14 }
   0x7   :  { %p665_p0 = scmp.ne.s32.totalorder %s37_s14, %s664_s15  ;;  %p670_p2 = scmp.lt.s32.totalorder %s664_s15, %s664_s15 }
   0x9   :  { %p671_p3 = por %p670_p2, %p669_p1 }
   0xb   :  { %p672_p4 = pnand %p671_p3, %p665_p0 }
   0xd   :  { %675 = shalt.err (!%p672_p4)
}
   0xe   :  { %39 = dma.hbm_to_vmem [thread:$0]  %s968_s1, 128, %s37_s14, [#allocation6]  }
   0xf   :  { %s807_s18 = smov [#allocation8]   ;;  %s808_s20 = smov [#allocation2]  }
  0x10   :  { %s59_s19 = sshll.u32 %s807_s18, 4  ;;  %s26_s21 = sshll.u32 %s808_s20, 4  ;;  %s60_s19 = int_to_ptr.vmem [resolvable:$true] %s59_s19  ;;  %s27_s21 = int_to_ptr.vmem [resolvable:$true] %s26_s21 }
  0x11   :  { %s684_s22 = scalar_lea.vmem %s60_s19, 2048  ;;  %p689_p6 = scmp.lt.s32.totalorder %s60_s19, %s60_s19 }
  0x12   :  { %p685_p5 = scmp.ne.s32.totalorder %s60_s19, %s684_s22  ;;  %p690_p7 = scmp.lt.s32.totalorder %s684_s22, %s684_s22 }
  0x14   :  { %p691_p8 = por %p690_p7, %p689_p6 }
  0x16   :  { %p692_p9 = pnand %p691_p8, %p685_p5 }
  0x18   :  { %695 = shalt.err (!%p692_p9)
}
  0x19   :  { %s809_s23 = smov 128   ;;  %s810_s24 = smov 8  }
  0x1a   :  { %65 = dma.hbm_to_vmem [thread:$0]  %s971_s4, 2048, %s60_s19, [#allocation9], %s809_s23, %s809_s23, %s810_s24  }
  0x1b   :  { %s704_s1 = scalar_lea.vmem %s27_s21, 128  ;;  %p709_p11 = scmp.lt.s32.totalorder %s27_s21, %s27_s21 }
  0x1c   :  { %p705_p10 = scmp.ne.s32.totalorder %s27_s21, %s704_s1  ;;  %p710_p12 = scmp.lt.s32.totalorder %s704_s1, %s704_s1 }
  0x1e   :  { %p711_p13 = por %p710_p12, %p709_p11 }
  0x20   :  { %p712_p0 = pnand %p711_p13, %p705_p10 }
  0x22   :  { %715 = shalt.err (!%p712_p0)
}
  0x23   :  { %29 = dma.hbm_to_vmem [thread:$0]  %s967_s0, 128, %s27_s21, [#allocation3]  }
  0x24   :  { %s811_s29 = smov [#allocation7]   ;;  %s812_s11 = smov [#allocation10]  }
  0x25   :  { %s45_s30 = sshll.u32 %s811_s29, 4  ;;  %s73_s12 = sshll.u32 %s812_s11, 4  ;;  %s46_s30 = int_to_ptr.vmem [resolvable:$true] %s45_s30  ;;  %s74_s12 = int_to_ptr.vmem [resolvable:$true] %s73_s12 }
  0x26   :  { %s724_s13 = scalar_lea.vmem %s46_s30, 512  ;;  %p729_p2 = scmp.lt.s32.totalorder %s46_s30, %s46_s30 }
  0x27   :  { %p725_p1 = scmp.ne.s32.totalorder %s46_s30, %s724_s13  ;;  %p730_p3 = scmp.lt.s32.totalorder %s724_s13, %s724_s13 }
  0x29   :  { %p731_p4 = por %p730_p3, %p729_p2 }
  0x2b   :  { %p732_p5 = pnand %p731_p4, %p725_p1 }
  0x2d   :  { %735 = shalt.err (!%p732_p5)
}
  0x2e   :  { %51 = dma.hbm_to_vmem [thread:$0]  %s969_s2, 512, %s46_s30, [#allocation6], %s809_s23, %s809_s23, %s810_s24  }
  0x2f   :  { %s744_s0 = scalar_lea.vmem %s74_s12, 768  ;;  %p749_p7 = scmp.lt.s32.totalorder %s74_s12, %s74_s12 }
  0x30   :  { %p745_p6 = scmp.ne.s32.totalorder %s74_s12, %s744_s0  ;;  %p750_p8 = scmp.lt.s32.totalorder %s744_s0, %s744_s0 }
  0x32   :  { %p751_p9 = por %p750_p8, %p749_p7 }
  0x34   :  { %p752_p10 = pnand %p751_p9, %p745_p6 }
  0x36   :  { %755 = shalt.err (!%p752_p10)
}
  0x37   :  { %79 = dma.hbm_to_vmem [thread:$0]  %s973_s6, 768, %s74_s12, [#allocation9], %s809_s23, %s809_s23, %s810_s24  }
  0x38   :  { %s813_s17 = smov [#allocation11]  }
  0x39   :  { %s87_s18 = sshll.u32 %s813_s17, 4  ;;  %s88_s18 = int_to_ptr.vmem [resolvable:$true] %s87_s18 }
  0x3a   :  { %s764_s19 = scalar_lea.vmem %s88_s18, 2048  ;;  %p769_p12 = scmp.lt.s32.totalorder %s88_s18, %s88_s18 }
  0x3b   :  { %p765_p11 = scmp.ne.s32.totalorder %s88_s18, %s764_s19  ;;  %p770_p13 = scmp.lt.s32.totalorder %s764_s19, %s764_s19 }
  0x3d   :  { %p771_p0 = por %p770_p13, %p769_p12 }
  0x3f   :  { %p772_p1 = pnand %p771_p0, %p765_p11 }
  0x41   :  { %775 = shalt.err (!%p772_p1)
}
  0x42   :  { %93 = dma.hbm_to_vmem [thread:$0]  %s975_s8, 2048, %s88_s18, [#allocation12], %s809_s23, %s809_s23, %s810_s24  }
  0x43   :  { %796 = dma.done.wait [#allocation3], 128  }
  0x44   :  { %797 = vsyncadd [#allocation3], 4294967168 }
  0x45   :  { %798 = dma.done.wait [#allocation6], 640  }
  0x46   :  { %799 = vsyncadd [#allocation6], 4294966656 }
  0x47   :  { %800 = dma.done.wait [#allocation9], 2816  }
  0x48   :  { %801 = vsyncadd [#allocation9], 4294964480 }
  0x49   :  { %802 = dma.done.wait [#allocation12], 2048  }
  0x4a   :  { %803 = vsyncadd [#allocation12], 4294965248  ;;  %v814_v0 = vmov 0.0   ;;  %vm815_vm0 = vmmov 0   ;;  %v300_v1 = vld [vmem:[#allocation10 + $0x28] sm:$0xff]  ;;  %v118_v2 = vld [vmem:[#allocation7 + $0x18] sm:$0xff] }
  0x4b   :  { %595 = vmatprep.subr.mxu0 %v814_v0  ;;  %549 = vmatprep.subr.mxu1 %v814_v0  ;;  %v299_v3 = vld [vmem:[#allocation10 + $0x20] sm:$0xff]  ;;  %v117_v4 = vld [vmem:[#allocation7 + $0x10] sm:$0xff]  ;;  %v298_v5 = vld [vmem:[#allocation10 + $0x18] sm:$0xff]  ;;  %vm126_vm1 = vcmask 261120   ;;  %vm308_vm2 = vcmask 392192   ;;  %vm477_vm3 = vcmask 130048  }
  0x4c   :  { %557 = vmatprep.mubr.msk.f32.mxu1 %vm815_vm0, %v814_v0  ;;  %607 = vmatprep.mubr.msk.f32.mxu0 %vm815_vm0, %v814_v0  ;;  %v116_v6 = vld [vmem:[#allocation7 + $0x8] sm:$0xff]  ;;  %v297_v7 = vld [vmem:[#allocation10 + $0x10] sm:$0xff]  ;;  %v115_v8 = vld [vmem:[#allocation7] sm:$0xff] }
  0x4d   :  { %596 = vmatpush3.msra.mxu0 %v300_v1  ;;  %550 = vmatpush3.msra.mxu1 %v118_v2  ;;  %v114_v9 = vld [vmem:[#allocation2] sm:$0xff]  ;;  %v296_v10 = vld [vmem:[#allocation10 + $0x8] sm:$0xff]  ;;  %v216_v11 = vld [vmem:[#allocation8 + $0x78] sm:$0xff] }
  0x4e   :  { %597 = vmatprep.subr.mxu0 %v814_v0  ;;  %551 = vmatprep.subr.mxu1 %v814_v0  ;;  %v295_v12 = vld [vmem:[#allocation10] sm:$0xff]  ;;  %v294_v13 = vld [vmem:[#allocation5] sm:$0xff]  ;;  %v215_v14 = vld [vmem:[#allocation8 + $0x70] sm:$0xff] }
  0x4f   :  { %598 = vmatpush3.msra.mxu0 %v299_v3  ;;  %552 = vmatpush3.msra.mxu1 %v117_v4  ;;  %v398_v15 = vld [vmem:[#allocation11 + $0x78] sm:$0xff]  ;;  %v397_v17 = vld [vmem:[#allocation11 + $0x70] sm:$0xff]  ;;  %v396_v19 = vld [vmem:[#allocation11 + $0x68] sm:$0xff] }
  0x50   :  { %599 = vmatprep.subr.mxu0 %v814_v0  ;;  %553 = vmatprep.subr.mxu1 %v814_v0  ;;  %v214_v16 = vld [vmem:[#allocation8 + $0x68] sm:$0xff]  ;;  %v213_v18 = vld [vmem:[#allocation8 + $0x60] sm:$0xff]  ;;  %v212_v20 = vld [vmem:[#allocation8 + $0x58] sm:$0xff] }
  0x51   :  { %600 = vmatpush3.msra.mxu0 %v298_v5  ;;  %554 = vmatpush3.msra.mxu1 %v116_v6  ;;  %v395_v21 = vld [vmem:[#allocation11 + $0x60] sm:$0xff]  ;;  %v394_v23 = vld [vmem:[#allocation11 + $0x58] sm:$0xff]  ;;  %v393_v25 = vld [vmem:[#allocation11 + $0x50] sm:$0xff] }
  0x52   :  { %601 = vmatprep.subr.mxu0 %v814_v0  ;;  %555 = vmatprep.subr.mxu1 %v814_v0  ;;  %v211_v22 = vld [vmem:[#allocation8 + $0x50] sm:$0xff]  ;;  %v210_v24 = vld [vmem:[#allocation8 + $0x48] sm:$0xff]  ;;  %v209_v26 = vld [vmem:[#allocation8 + $0x40] sm:$0xff] }
  0x53   :  { %602 = vmatpush3.msra.mxu0 %v297_v7  ;;  %556 = vmatpush3.msra.mxu1 %v115_v8  ;;  %v392_v27 = vld [vmem:[#allocation11 + $0x48] sm:$0xff]  ;;  %v391_v29 = vld [vmem:[#allocation11 + $0x40] sm:$0xff]  ;;  %v390_v31 = vld [vmem:[#allocation11 + $0x38] sm:$0xff] }
  0x54   :  { %603 = vmatprep.subr.mxu0 %v814_v0  ;;  %558 = vmatmul.mubr.msk.f32.vlgmr.msra.gmra.mxu1 %vm126_vm1, %v114_v9  ;;  %v208_v28 = vld [vmem:[#allocation8 + $0x38] sm:$0xff]  ;;  %v207_v30 = vld [vmem:[#allocation8 + $0x30] sm:$0xff]  ;;  %v206_v32 = vld [vmem:[#allocation8 + $0x28] sm:$0xff] }
  0x55   :  { %604 = vmatpush3.msra.mxu0 %v296_v10  ;;  %560 = vmatprep.subr.mxu1 %v814_v0  ;;  %v389_v33 = vld [vmem:[#allocation11 + $0x30] sm:$0xff]  ;;  %v388_v35 = vld [vmem:[#allocation11 + $0x28] sm:$0xff]  ;;  %v387_v37 = vld [vmem:[#allocation11 + $0x20] sm:$0xff] }
  0x56   :  { %605 = vmatprep.subr.mxu0 %v814_v0  ;;  %561 = vmatpush3.msra.mxu1 %v216_v11  ;;  %v205_v34 = vld [vmem:[#allocation8 + $0x20] sm:$0xff]  ;;  %v204_v36 = vld [vmem:[#allocation8 + $0x18] sm:$0xff]  ;;  %v203_v38 = vld [vmem:[#allocation8 + $0x10] sm:$0xff] }
  0x57   :  { %606 = vmatpush3.msra.mxu0 %v295_v12  ;;  %562 = vmatprep.subr.mxu1 %v814_v0  ;;  %v386_v39 = vld [vmem:[#allocation11 + $0x18] sm:$0xff]  ;;  %v385_v41 = vld [vmem:[#allocation11 + $0x10] sm:$0xff]  ;;  %v384_v43 = vld [vmem:[#allocation11 + $0x8] sm:$0xff] }
  0x58   :  { %608 = vmatmul.mubr.msk.f32.vlgmr.msra.gmra.mxu0 %vm308_vm2, %v294_v13  ;;  %610 = vmatprep.subr.mxu0 %v814_v0  ;;  %v202_v40 = vld [vmem:[#allocation8 + $0x8] sm:$0xff]  ;;  %v201_v42 = vld [vmem:[#allocation8] sm:$0xff]  ;;  %v383_v44 = vld [vmem:[#allocation11] sm:$0xff] }
  0x59   :  { %563 = vmatpush3.msra.mxu1 %v215_v14  ;;  %611 = vmatpush3.msra.mxu0 %v398_v15  ;;  %v497_v45 = vld [vmem:[%s970_s3] ss:$0 sm:$0xff] }
  0x5a   :  { %564 = vmatprep.subr.mxu1 %v814_v0  ;;  %612 = vmatprep.subr.mxu0 %v814_v0  ;;  %v500_v49 = vld [vmem:[%s974_s7] ss:$0 sm:$0xff]  ;;  %s816_s7 = smov [#allocation13]  }
  0x5b   :  { %565 = vmatpush3.msra.mxu1 %v214_v16  ;;  %613 = vmatpush3.msra.mxu0 %v397_v17  ;;  %v499_v55 = vld [vmem:[%s972_s5] ss:$0 sm:$0xff]  ;;  %s485_s26 = sshll.u32 %s816_s7, 4  ;;  %s486_s26 = int_to_ptr.vmem [resolvable:$true] %s485_s26 }
  0x5c   :  { %566 = vmatprep.subr.mxu1 %v814_v0  ;;  %614 = vmatprep.subr.mxu0 %v814_v0  ;;  %v502_v58 = vld [vmem:[%s976_s9] ss:$0 sm:$0xff]  ;;  %s776_s1 = scalar_lea.vmem %s486_s26, 128  ;;  %p781_p3 = scmp.lt.s32.totalorder %s486_s26, %s486_s26 }
  0x5d   :  { %567 = vmatpush3.msra.mxu1 %v213_v18  ;;  %615 = vmatpush3.msra.mxu0 %v396_v19  ;;  %p777_p2 = scmp.ne.s32.totalorder %s486_s26, %s776_s1  ;;  %p782_p4 = scmp.lt.s32.totalorder %s776_s1, %s776_s1 }
  0x5e   :  { %568 = vmatprep.subr.mxu1 %v814_v0  ;;  %616 = vmatprep.subr.mxu0 %v814_v0 }
  0x5f   :  { %569 = vmatpush3.msra.mxu1 %v212_v20  ;;  %617 = vmatpush3.msra.mxu0 %v395_v21  ;;  %p783_p5 = por %p782_p4, %p781_p3 }
  0x60   :  { %570 = vmatprep.subr.mxu1 %v814_v0  ;;  %618 = vmatprep.subr.mxu0 %v814_v0 }
  0x61   :  { %571 = vmatpush3.msra.mxu1 %v211_v22  ;;  %619 = vmatpush3.msra.mxu0 %v394_v23  ;;  %p784_p6 = pnand %p783_p5, %p777_p2 }
  0x62   :  { %572 = vmatprep.subr.mxu1 %v814_v0  ;;  %620 = vmatprep.subr.mxu0 %v814_v0 }
  0x63   :  { %573 = vmatpush3.msra.mxu1 %v210_v24  ;;  %621 = vmatpush3.msra.mxu0 %v393_v25 }
  0x64   :  { %574 = vmatprep.subr.mxu1 %v814_v0  ;;  %622 = vmatprep.subr.mxu0 %v814_v0 }
  0x65   :  { %575 = vmatpush3.msra.mxu1 %v209_v26  ;;  %623 = vmatpush3.msra.mxu0 %v392_v27 }
  0x66   :  { %576 = vmatprep.subr.mxu1 %v814_v0  ;;  %624 = vmatprep.subr.mxu0 %v814_v0 }
  0x67   :  { %577 = vmatpush3.msra.mxu1 %v208_v28  ;;  %625 = vmatpush3.msra.mxu0 %v391_v29 }
  0x68   :  { %578 = vmatprep.subr.mxu1 %v814_v0  ;;  %626 = vmatprep.subr.mxu0 %v814_v0 }
  0x69   :  { %579 = vmatpush3.msra.mxu1 %v207_v30  ;;  %627 = vmatpush3.msra.mxu0 %v390_v31 }
  0x6a   :  { %580 = vmatprep.subr.mxu1 %v814_v0  ;;  %628 = vmatprep.subr.mxu0 %v814_v0 }
  0x6b   :  { %581 = vmatpush3.msra.mxu1 %v206_v32  ;;  %629 = vmatpush3.msra.mxu0 %v389_v33 }
  0x6c   :  { %582 = vmatprep.subr.mxu1 %v814_v0  ;;  %630 = vmatprep.subr.mxu0 %v814_v0 }
  0x6d   :  { %583 = vmatpush3.msra.mxu1 %v205_v34  ;;  %631 = vmatpush3.msra.mxu0 %v388_v35 }
  0x6e   :  { %584 = vmatprep.subr.mxu1 %v814_v0  ;;  %632 = vmatprep.subr.mxu0 %v814_v0 }
  0x6f   :  { %585 = vmatpush3.msra.mxu1 %v204_v36  ;;  %633 = vmatpush3.msra.mxu0 %v387_v37 }
  0x70   :  { %586 = vmatprep.subr.mxu1 %v814_v0  ;;  %634 = vmatprep.subr.mxu0 %v814_v0 }
  0x71   :  { %592 = vmatprep.mubr.msk.f32.mxu1 %vm815_vm0, %v814_v0  ;;  %642 = vmatprep.mubr.msk.f32.mxu0 %vm815_vm0, %v814_v0 }
  0x72   :  { %587 = vmatpush3.msra.mxu1 %v203_v38  ;;  %635 = vmatpush3.msra.mxu0 %v386_v39 }
  0x73   :  { %588 = vmatprep.subr.mxu1 %v814_v0  ;;  %636 = vmatprep.subr.mxu0 %v814_v0 }
  0x74   :  { %589 = vmatpush3.msra.mxu1 %v202_v40  ;;  %637 = vmatpush3.msra.mxu0 %v385_v41 }
  0x75   :  { %590 = vmatprep.subr.mxu1 %v814_v0  ;;  %638 = vmatprep.subr.mxu0 %v814_v0 }
  0x76   :  { %591 = vmatpush3.msra.mxu1 %v201_v42  ;;  %639 = vmatpush3.msra.mxu0 %v384_v43 }
  0x77   :  { %640 = vmatprep.subr.mxu0 %v814_v0 }
  0x78   :  { %641 = vmatpush3.msra.mxu0 %v383_v44 }
 0x114   :  { %v196_v46 = vpop.f32.mrf.mxu1 }
 0x115   :  { %v197_v47 = vadd.f32 %v497_v45, %v196_v46 }
 0x116   :  { %v559_v48 = vpop.f32.mrf.mxu1 }
 0x117   :  { %v200_v50 = vmax.f32 %v197_v47, 0.0 }
 0x118   :  { %v378_v51 = vpop.f32.mrf.mxu0 }
 0x119   :  { %v379_v52 = vadd.f32 %v500_v49, %v378_v51  ;;  %593 = vmatmul.mubr.f32.vlgmr.msra.gmra.mxu1 %v200_v50 }
 0x11a   :  { %v609_v53 = vpop.f32.mrf.mxu0 }
 0x11b   :  { %v382_v54 = vmax.f32 %v379_v52, 0.0 }
 0x11d   :  { %643 = vmatmul.mubr.f32.vlgmr.msra.gmra.mxu0 %v382_v54 }
 0x1d9   :  { %v290_v56 = vpop.f32.mrf.mxu1 }
 0x1da   :  { %v291_v59 = vadd.f32 %v499_v55, %v290_v56 }
 0x1db   :  { %v594_v57 = vpop.f32.mrf.mxu1 }
 0x1dd   :  { %v472_v60 = vpop.f32.mrf.mxu0 }
 0x1de   :  { %v473_v61 = vadd.f32 %v502_v58, %v472_v60 }
 0x1df   :  { %v644_v62 = vpop.f32.mrf.mxu0 }
 0x1e0   :  { %v476_v63 = vmul.f32 %v473_v61, %v291_v59 }
 0x1e2   :  { %478 = vst.msk [vmem:[#allocation13] sm:$0xff] %vm477_vm3, %v476_v63 }
 0x1e3   :  { %787 = shalt.err (!%p784_p6)
}
 0x1e4   :  { %488 = dma.vmem_to_hbm [thread:$0]  %s486_s26, 128, %s977_s10, [#allocation4]  }
 0x1e5   :  { %804 = dma.done.wait [#allocation4], 128  }
 0x1e6   :  { %805 = vsyncadd [#allocation4], 4294967168 }
 0x1e7   :  { %492 = vsyncpa [#allocation3], 1 }
 0x1e8   :  { %493 = vsyncpa [#allocation6], 1 }
 0x1e9   :  { %494 = vsyncpa [#allocation9], 1 }
 0x1ea   :  { %495 = vsyncpa [#allocation12], 1 }
 0x1eb   :  { %496 = vsyncpa [#allocation4], 1 }

</bundles_post_ra>
